<compile_context>
chip_gen: v7x
topology: tpu7x:2x2x1
jax: 0.10.0
libtpu: 0.0.40
codegen_flags: <defaults>
</compile_context>

<pallas_src>
import jax
import jax.numpy as jnp
from jax.experimental import pallas as pl
from jax.experimental.pallas import tpu as pltpu


def _round_up(x, m):
    return ((x + m - 1) // m) * m


def _pick_tile(dim_padded, target, unit):
    """Largest multiple of `unit` that divides `dim_padded` and is <= target
    (always at least `unit`).  `dim_padded` must be a multiple of `unit`."""
    best = unit
    t = unit
    limit = max(target, unit)
    while t <= dim_padded:
        if dim_padded % t == 0 and t <= limit:
            best = t
        t += unit
    return best


def joint_kernel(enc_ref, pred_ref, w_ref, b_ref, out_ref, h2_ref):
    # enc_ref:  [1, tt, E] f32     pred_ref: [1, tu, E] f32
    # w_ref:    [E, tv]    bf16    b_ref:    [1, tv]    f32
    # out_ref:  [1, tt, tu, tv]    h2_ref:   [tt*tu, E] bf16 VMEM scratch
    tt = enc_ref.shape[1]
    tu = pred_ref.shape[1]

    # V tiles are the innermost grid axis: compute the broadcast-add + tanh
    # once per (b, ti, ui) and reuse the cached bf16 tile for all vocab slabs.
    @pl.when(pl.program_id(3) == 0)
    def _():
        e = enc_ref[0]                                   # [tt, E] f32
        p = pred_ref[0]                                  # [tu, E] f32
        h = jnp.tanh(e[:, None, :] + p[None, :, :])      # [tt, tu, E] (VPU + EUP)
        h2_ref[...] = h.reshape(tt * tu, -1).astype(jnp.bfloat16)

    # ffn_out: Linear(join_dim -> vocab_size) on the MXU, f32 accumulation.
    logits = jnp.dot(h2_ref[...], w_ref[...], preferred_element_type=jnp.float32)
    logits = logits + b_ref[0][None, :]
    out_ref[0] = logits.reshape(tt, tu, -1).astype(out_ref.dtype)


def prepare_joint_params(w_out, b_out):
    """Pad vocab to a multiple of 128 (lane-dense output) and cast W to bf16.

    Hoisted out of the forward so the pad/cast runs once per model instead of
    on every call (it is a full read+write of W otherwise)."""
    V = w_out.shape[1]
    V_p = _round_up(V, 128)
    w_p = jnp.pad(w_out, ((0, 0), (0, V_p - V))).astype(jnp.bfloat16)
    b_p = jnp.pad(b_out, ((0, V_p - V),)).reshape(1, V_p).astype(jnp.float32)
    return w_p, b_p


def joint_forward(enc_out, pred_out, w_p, b_p, vocab_size, *,
                  tt=32, tu=32, tv=1024, out_dtype=jnp.bfloat16):
    """enc_out: [B,T,E], pred_out: [B,U,P] (E == P == join_dim),
       w_p: [E, V_p] bf16 (V padded to mult. of 128), b_p: [1, V_p] f32,
       vocab_size: original V.  Returns [B, T, U, V] in `out_dtype`."""
    B, T, E = enc_out.shape
    _, U, P = pred_out.shape
    assert P == E, "Unmatched enc_dim, pred_dim, and join_dim"
    V = vocab_size
    V_p = w_p.shape[1]
    assert V_p == _round_up(V, 128) and w_p.shape[0] == E

    # --- tiles: T/U padded only to multiples of 8, V only to multiple of 128;
    #     tile sizes are exact divisors of the padded dims (no over-padding).
    T_p = _round_up(T, 8)
    U_p = _round_up(U, 8)
    tt = _pick_tile(T_p, tt, 8)
    tu = _pick_tile(U_p, tu, 8)
    tv = _pick_tile(V_p, tv, 128)

    enc_p = enc_out if T_p == T else jnp.pad(enc_out, ((0, 0), (0, T_p - T), (0, 0)))
    pred_p = pred_out if U_p == U else jnp.pad(pred_out, ((0, 0), (0, U_p - U), (0, 0)))

    nt, nu, nv = T_p // tt, U_p // tu, V_p // tv
    grid = (B, nt, nu, nv)   # V innermost -> cached h2 tile reused across vocab slabs

    # VMEM budget: double-buffered I/O tiles + h2 scratch + f32 temporaries,
    # capped at 48 MiB to leave headroom on v7x's 64 MiB physical VMEM.
    out_bytes = jnp.dtype(out_dtype).itemsize
    block_bytes = (2 * (tt * E * 4 + tu * E * 4 + E * tv * 2 + tv * 4
                        + tt * tu * tv * out_bytes)          # pipelined in/out buffers
                   + tt * tu * E * 2                          # h2 bf16 scratch
                   + tt * tu * E * 4                          # f32 h temp
                   + tt * tu * tv * 4)                        # f32 logits temp
    vmem_limit = int(min(48 * 1024 * 1024, max(32 * 1024 * 1024, 2 * block_bytes)))

    cost = pl.CostEstimate(
        flops=2 * B * T_p * U_p * E * V_p,
        transcendentals=B * T_p * U_p * E,                    # tanh computed once per h tile
        bytes_accessed=(enc_p.size * 4 + pred_p.size * 4
                        + B * nt * nu * (w_p.size * 2 + b_p.size * 4)
                        + B * T_p * U_p * V_p * out_bytes),
    )

    out_padded = pl.pallas_call(
        joint_kernel,
        out_shape=jax.ShapeDtypeStruct((B, T_p, U_p, V_p), out_dtype),
        grid_spec=pltpu.PrefetchScalarGridSpec(
            num_scalar_prefetch=0,
            grid=grid,
            in_specs=[
                pl.BlockSpec((1, tt, E), lambda b, ti, ui, vj: (b, ti, 0)),
                pl.BlockSpec((1, tu, E), lambda b, ti, ui, vj: (b, ui, 0)),
                pl.BlockSpec((E, tv), lambda b, ti, ui, vj: (0, vj)),
                pl.BlockSpec((1, tv), lambda b, ti, ui, vj: (0, vj)),
            ],
            out_specs=pl.BlockSpec((1, tt, tu, tv),
                                   lambda b, ti, ui, vj: (b, ti, ui, vj)),
            scratch_shapes=[pltpu.VMEM((tt * tu, E), jnp.bfloat16)],
        ),
        compiler_params=pltpu.CompilerParams(
            dimension_semantics=("parallel", "parallel", "parallel", "arbitrary"),
            vmem_limit_bytes=vmem_limit),
        cost_estimate=cost,
    )(enc_p, pred_p, w_p, b_p)

    if T_p == T and U_p == U and V_p == V:
        return out_padded                     # no extra copy when already aligned
    return out_padded[:, :T, :U, :V]


if __name__ == "__main__":
    # Small shapes consistent with the module's forward:
    #   enc_out  [B, T, E], pred_out [B, U, P] with E == P == join_dim.
    # U and V are deliberately not tile-aligned to exercise the padding path.
    B, T, U = 2, 16, 12
    enc_dim = pred_dim = join_dim = 128
    vocab_size = 200

    key = jax.random.PRNGKey(0)
    k_enc, k_pred, k_w, k_b = jax.random.split(key, 4)

    enc_out = jax.random.normal(k_enc, (B, T, enc_dim), dtype=jnp.float32)
    pred_out = jax.random.normal(k_pred, (B, U, pred_dim), dtype=jnp.float32)

    # Deterministic parameter init for ffn_out (Linear(join_dim, vocab_size)),
    # mimicking torch's uniform(-1/sqrt(fan_in), 1/sqrt(fan_in)) init.
    bound = 1.0 / jnp.sqrt(join_dim)
    # Stored as [join_dim, vocab_size] so the kernel does x @ W directly.
    w_out = jax.random.uniform(k_w, (join_dim, vocab_size),
                               minval=-bound, maxval=bound, dtype=jnp.float32)
    b_out = jax.random.uniform(k_b, (vocab_size,),
                               minval=-bound, maxval=bound, dtype=jnp.float32)

    # Hoisted once per model (not per forward call).
    w_p, b_p = prepare_joint_params(w_out, b_out)

    fwd = jax.jit(lambda e, p, w, b: joint_forward(e, p, w, b, vocab_size))
    out = jax.block_until_ready(fwd(enc_out, pred_out, w_p, b_p))

    # Pure-JAX f32 reference (kernel uses bf16 MXU operands / bf16 output with
    # f32 accumulation, so allow a loose-but-safe tolerance).
    ref = jnp.tanh(enc_out[:, :, None, :] + pred_out[:, None, :, :])
    ref = jnp.einsum("btue,ev->btuv", ref, w_out) + b_out
    assert out.shape == (B, T, U, vocab_size)
    err = jnp.max(jnp.abs(out.astype(jnp.float32) - ref))
    assert jnp.allclose(out.astype(jnp.float32), ref, atol=3e-2, rtol=3e-2), \
        f"max abs err {err}"

    print("KERNEL_OK")
</pallas_src>

<mosaic_0001>
module attributes {stable_mosaic.version = 11 : i64} {
  func.func @joint_kernel(%arg0: i32, %arg1: i32, %arg2: i32, %arg3: i32, %arg4: memref<1x16x128xf32, #tpu.memory_space<vmem>>, %arg5: memref<1x16x128xf32, #tpu.memory_space<vmem>>, %arg6: memref<128x256xbf16, #tpu.memory_space<vmem>>, %arg7: memref<1x256xf32, #tpu.memory_space<vmem>>, %arg8: memref<1x16x16x256xbf16, #tpu.memory_space<vmem>>, %arg9: memref<256x128xbf16, #tpu.memory_space<vmem>>) attributes {dimension_semantics = [#tpu.dimension_semantics<parallel>, #tpu.dimension_semantics<parallel>, #tpu.dimension_semantics<parallel>, #tpu.dimension_semantics<arbitrary>], iteration_bounds = array<i64: 2, 1, 1, 1>, scalar_prefetch = 0 : i64, scratch_operands = 1 : i64, tpu.core_type = #tpu.core_type<tc>, window_params = [{transform_indices = @transform_0, window_bounds = array<i64: 1, 16, 128>}, {transform_indices = @transform_1, window_bounds = array<i64: 1, 16, 128>}, {transform_indices = @transform_2, window_bounds = array<i64: 128, 256>}, {transform_indices = @transform_3, window_bounds = array<i64: 1, 256>}, {transform_indices = @transform_4, window_bounds = array<i64: 1, 16, 16, 256>}]} {
    %c0_i32 = arith.constant 0 : i32
    %0 = arith.cmpi eq, %arg3, %c0_i32 : i32
    %1 = arith.extui %0 : i1 to i32
    %c0_i32_0 = arith.constant 0 : i32
    %2 = arith.cmpi ne, %1, %c0_i32_0 : i32
    scf.if %2 {
      %c0_10 = arith.constant 0 : index
      %c0_11 = arith.constant 0 : index
      %c0_12 = arith.constant 0 : index
      %16 = vector.load %arg4[%c0_10, %c0_11, %c0_12] : memref<1x16x128xf32, #tpu.memory_space<vmem>>, vector<1x16x128xf32>
      %17 = vector.shape_cast %16 : vector<1x16x128xf32> to vector<16x128xf32>
      %c0_13 = arith.constant 0 : index
      %c0_14 = arith.constant 0 : index
      %c0_15 = arith.constant 0 : index
      %18 = vector.load %arg5[%c0_13, %c0_14, %c0_15] : memref<1x16x128xf32, #tpu.memory_space<vmem>>, vector<1x16x128xf32>
      %19 = vector.shape_cast %18 : vector<1x16x128xf32> to vector<16x128xf32>
      %20 = vector.shape_cast %17 : vector<16x128xf32> to vector<16x1x128xf32>
      %21 = vector.shape_cast %19 : vector<16x128xf32> to vector<1x16x128xf32>
      %22 = vector.broadcast %20 : vector<16x1x128xf32> to vector<16x16x128xf32>
      %23 = vector.broadcast %21 : vector<1x16x128xf32> to vector<16x16x128xf32>
      %24 = arith.addf %22, %23 : vector<16x16x128xf32>
      %25 = math.tanh %24 : vector<16x16x128xf32>
      %26 = vector.shape_cast %25 : vector<16x16x128xf32> to vector<256x128xf32>
      %27 = arith.truncf %26 : vector<256x128xf32> to vector<256x128xbf16>
      %c0_16 = arith.constant 0 : index
      %c0_17 = arith.constant 0 : index
      %28 = vector.load %arg9[%c0_16, %c0_17] : memref<256x128xbf16, #tpu.memory_space<vmem>>, vector<256x128xbf16>
      tpu.vector_store %arg9[%c0_16, %c0_17], %27 {strides = array<i32>} : memref<256x128xbf16, #tpu.memory_space<vmem>>, vector<256x128xbf16>,
    } else {
    }
    %c0 = arith.constant 0 : index
    %c0_1 = arith.constant 0 : index
    %3 = vector.load %arg9[%c0, %c0_1] : memref<256x128xbf16, #tpu.memory_space<vmem>>, vector<256x128xbf16>
    %c0_2 = arith.constant 0 : index
    %c0_3 = arith.constant 0 : index
    %4 = vector.load %arg6[%c0_2, %c0_3] : memref<128x256xbf16, #tpu.memory_space<vmem>>, vector<128x256xbf16>
    %cst = arith.constant dense<0.000000e+00> : vector<256x256xf32>
    %5 = tpu.matmul %3, %4, %cst {dimension_numbers = #tpu.dot_dimension_numbers<[1], [0], [0], [1], [0, 0, 1, 1], [], []>} : vector<256x128xbf16>, vector<128x256xbf16>, vector<256x256xf32> -> vector<256x256xf32>
    %c0_4 = arith.constant 0 : index
    %c0_5 = arith.constant 0 : index
    %6 = vector.load %arg7[%c0_4, %c0_5] : memref<1x256xf32, #tpu.memory_space<vmem>>, vector<1x256xf32>
    %7 = vector.shape_cast %6 : vector<1x256xf32> to vector<256xf32>
    %8 = vector.shape_cast %7 : vector<256xf32> to vector<1x256xf32>
    %9 = vector.broadcast %8 : vector<1x256xf32> to vector<256x256xf32>
    %10 = arith.addf %5, %9 : vector<256x256xf32>
    %11 = vector.shape_cast %10 : vector<256x256xf32> to vector<16x16x256xf32>
    %12 = arith.truncf %11 : vector<16x16x256xf32> to vector<16x16x256xbf16>
    %c0_6 = arith.constant 0 : index
    %c0_7 = arith.constant 0 : index
    %c0_8 = arith.constant 0 : index
    %c0_9 = arith.constant 0 : index
    %13 = vector.load %arg8[%c0_6, %c0_7, %c0_8, %c0_9] : memref<1x16x16x256xbf16, #tpu.memory_space<vmem>>, vector<1x16x16x256xbf16>
    %14 = vector.shape_cast %13 : vector<1x16x16x256xbf16> to vector<16x16x256xbf16>
    %15 = vector.shape_cast %12 : vector<16x16x256xbf16> to vector<1x16x16x256xbf16>
    tpu.vector_store %arg8[%c0_6, %c0_7, %c0_8, %c0_9], %15 {strides = array<i32>} : memref<1x16x16x256xbf16, #tpu.memory_space<vmem>>, vector<1x16x16x256xbf16>,
    return
  }
  func.func @transform_0(%arg0: i32, %arg1: i32, %arg2: i32, %arg3: i32) -> (i32, i32, i32) {
    %c0_i32 = arith.constant 0 : i32
    %c0_i32_0 = arith.constant 0 : i32
    return %arg0, %arg1, %c0_i32 : i32, i32, i32
  }
  func.func @transform_1(%arg0: i32, %arg1: i32, %arg2: i32, %arg3: i32) -> (i32, i32, i32) {
    %c0_i32 = arith.constant 0 : i32
    %c0_i32_0 = arith.constant 0 : i32
    return %arg0, %arg2, %c0_i32 : i32, i32, i32
  }
  func.func @transform_2(%arg0: i32, %arg1: i32, %arg2: i32, %arg3: i32) -> (i32, i32) {
    %c0_i32 = arith.constant 0 : i32
    %c0_i32_0 = arith.constant 0 : i32
    return %c0_i32, %arg3 : i32, i32
  }
  func.func @transform_3(%arg0: i32, %arg1: i32, %arg2: i32, %arg3: i32) -> (i32, i32) {
    %c0_i32 = arith.constant 0 : i32
    %c0_i32_0 = arith.constant 0 : i32
    return %c0_i32, %arg3 : i32, i32
  }
  func.func @transform_4(%arg0: i32, %arg1: i32, %arg2: i32, %arg3: i32) -> (i32, i32, i32, i32) {
    %c0_i32 = arith.constant 0 : i32
    return %arg0, %arg1, %arg2, %arg3 : i32, i32, i32, i32
  }
}

</mosaic_0001>

<bundles_post_ra>
// kernel: _lambda_.1
= control target key start
LH: loop header
LB: loop body
LE: loop exit
PB: predicated region body
PF: predicated region fallthrough
CT: control target
= control target key end

     0   :  { %9 = vsyncpa [#allocation4], 0  ;;  %s2141_s0 = inlined_call_operand.hbm [shape: f32[2,16,128], index: 0, kind: input, shape index: {}]   ;;  %s2142_s1 = inlined_call_operand.vmem [shape: f32[2,16,128], index: 1, kind: input, shape index: {}]   ;;  %s2143_s2 = inlined_call_operand.vmem [shape: bf16[128,256], index: 2, kind: input, shape index: {}]   ;;  %s2144_s3 = inlined_call_operand.vmem [shape: f32[1,256], index: 3, kind: input, shape index: {}]   ;;  %s2145_s4 = inlined_call_operand.vmem [shape: bf16[2,16,16,256], index: 4, kind: output, shape index: {}]  }
   0x1   :  { %11 = vsyncpa [#allocation4 + $0x1], 0  ;;  %s1750_s15 = smov 0   ;;  %s1752_s16 = smov 0  }
   0x2   :  { %s1754_s17 = smov 0   ;;  %s1756_s18 = smov 0  }
   0x3   :  { %s1758_s19 = smov 0   ;;  %s1760_s20 = smov 0  }
   0x4 LB: > { %s1373_s21 = sadd.s32 4294967295, %s1718_s20   ;;  %s43_s22 = sadd.s32 1, %s1714_s19  ;;  %s1718_s20 = sphi %s1760_s20, %s17_s20   ;;  %s1714_s19 = sphi %s1758_s19, %s2153_s19   ;;  %s1710_s18 = sphi %s1756_s18, %s2152_s18   ;;  %s1706_s17 = sphi %s1754_s17, %s2151_s17   ;;  %s1702_s16 = sphi %s1752_s16, %s2150_s16   ;;  %s1698_s15 = sphi %s1750_s15, %s2149_s15  }
   0x5   : > { %p45_p0 = scmp.ge.s32.totalorder %s43_s22, 2  ;;  %s52_s23 = sadd.s32 1, %s1706_s17 }
   0x6   : > { %p59_p1 = scmp.ne.s32.totalorder %s1706_s17, %s1702_s16  ;;  %p60_p2 = scmp.eq.s32.totalorder %s1718_s20, 0 }
   0x7   : > { %s2155_s22 = smov (%p45_p0, %s43_s22), 0  ;;  %p65_p4 = scmp.ne.s32.totalorder %s1702_s16, %s1698_s15 }
   0x8   : > { %p1786_p3 = por %p60_p2, %p59_p1  ;;  %s47_s25 = ssub.s32 %s1714_s19, %s2155_s22 }
   0x9   : > { %p66_p5 = scmp.eq.s32.totalorder %s1373_s21, 0  ;;  %p50_p6 = scmp.eq.s32.totalorder %s47_s25, 0 }
   0xa   : > { %p1495_p8 = scmp.lt.s32.totalorder %s1718_s20, 2  ;;  %s218_s28 = sand.u32 1, %s1706_s17  }
   0xb   : > { %p1793_p7 = por %p66_p5, %p65_p4  ;;  %s1438_s29 = sshll.u32 %s1714_s19, 8 }
   0xc   : > { %s1799_s27 = scalar_select %p50_p6, %s1706_s17, %s52_s23  }
   0xd   : > { %s1379_s30 = sshll.u32 %s218_s28, 4  ;;  %s1806_s7 = scalar_lea.hbm %s2141_s0, %s1438_s29 }
   0xe   : > { %s222_s8 = scalar_lea.vmem [#allocation3], %s1379_s30  ;;  %p1810_p9 = pnand %p1495_p8, %p1786_p3 }
   0xf   : > { %s231_s9 = sshll.u32 %s222_s8, 4  ;;  %s1816_s11 = scalar_lea.sflag [#allocation4], %s218_s28  ;;  %s1814_s9 = int_to_ptr.vmem [resolvable:$true] %s231_s9 }
  0x10   : > { %s1638_s12 = scalar_lea.hbm %s1806_s7, 256  ;;  %p1640_p11 = pneg %p1810_p9 }
  0x11   : > { %p1639_p10 = scmp.ne.s32.totalorder %s1806_s7, %s1638_s12  ;;  %s1643_s15 = scalar_lea.hbm %s2141_s0, 512 }
  0x12   : > { %p1644_p0 = scmp.lt.u32.totalorder %s1806_s7, %s2141_s0  ;;  %p1645_p1 = scmp.lt.u32.totalorder %s1643_s15, %s1638_s12 }
  0x13   : > { %p1641_p12 = pnand %p1640_p11, %p1639_p10  ;;  %p1647_p3 = scmp.lt.u32.totalorder %s1638_s12, %s1806_s7 }
  0x14   : > { %p1646_p2 = por %p1645_p1, %p1644_p0 }
  0x15   : > { %p1642_p13 = pneg %p1641_p12 }
  0x16   : > { %p1648_p4 = por %p1647_p3, %p1646_p2 }
  0x18   : > { %p1649_p5 = pnand %p1648_p4, %p1642_p13 }
  0x1a   : > { %1652 = shalt.err (!%p1649_p5)
}
  0x1b   : > { %s1653_s24 = scalar_lea.vmem %s1814_s9, 256  ;;  %s1720_s25 = smov [#allocation3]  }
  0x1c   : > { %p1654_p6 = scmp.ne.s32.totalorder %s1814_s9, %s1653_s24  ;;  %s1658_s28 = sshll.u32 %s1720_s25, 4  ;;  %s1659_s28 = int_to_ptr.vmem [resolvable:$false] %s1658_s28 }
  0x1d   : > { %s1660_s29 = scalar_lea.vmem %s1659_s28, 512  ;;  %p1661_p12 = scmp.lt.s32.totalorder %s1814_s9, %s1659_s28 }
  0x1e   : > { %p1656_p8 = pnand %p1654_p6, %p1640_p11  ;;  %p1662_p0 = scmp.lt.s32.totalorder %s1660_s29, %s1653_s24 }
  0x20   : > { %p1657_p10 = pneg %p1656_p8  ;;  %p1663_p1 = por %p1662_p0, %p1661_p12 }
  0x22   : > { %p1664_p2 = pnand %p1663_p1, %p1657_p10 }
  0x24   : > { %1667 = shalt.err (!%p1664_p2)
}
  0x25   : > { %s1721_s30 = smov 128   ;;  %s1722_s5 = smov 8  }
  0x26   : > { %1494 = dma.hbm_to_vmem [thread:$0]  (!%p1810_p9), %s1806_s7, 256, %s1814_s9, %s1816_s11, %s1721_s30, %s1721_s30, %s1722_s5  }
  0x27   : > { %p1382_p11 = scmp.ge.s32.totalorder %s1718_s20, 1  ;;  %p252_p13 = scmp.lt.s32.totalorder %s1718_s20, 3 }
  0x29   : > { %p253_p3 = pnand %p1382_p11, %p252_p13 }
  0x2a   : > { %s258_s6 = sand.u32 (!%p253_p3), 1, %s1702_s16  }
  0x2b   : > { %256 = sbr.rel (%p253_p3) target bundleno = 361 (0x169), region = 36  ;;  %s1847_s8 = sshll.u32 (!%p253_p3), %s258_s6, 4 }
  0x2c   : > { %s259_s12 = scalar_lea.sflag (!%p253_p3), [#allocation4], %s258_s6  ;;  %s262_s13 = scalar_lea.vmem (!%p253_p3), [#allocation3], %s1847_s8 }
  0x32   : > { %1693 = dma.done.wait (%p1793_p7), %s259_s12, 256  }
  0x33   : > { %1695 = vsyncadd (%p1793_p7), %s259_s12, 4294967040  ;;  %v1723_v0 = vmov 0   ;;  %v1724_v1 = vmov 1966171168   ;;  %v378_v3 = vlaneseq  ;;  %v1548_v4 = vld [vmem:[%s2143_s2 + $0x4] ss:$8 sps:$4 sm:$0xff]  }
  0x34   : > { %804 = vmatprep.mubr.bf16.mxu0 %v1723_v0  ;;  %884 = vmatprep.mubr.bf16.mxu1 %v1723_v0  ;;  %v376_v2 = vunpack.c.l.s4 %v1724_v1  ;;  %p321_p9 = scmp.lt.s32.totalorder %s1710_s18, 1  ;;  %v1550_v5 = vld [vmem:[%s2143_s2] ss:$8 sps:$4 sm:$0xff]   ;;  %v1551_v6 = vld [vmem:[%s2143_s2 + $0x14] ss:$8 sps:$4 sm:$0xff]  }
  0x35   : > { %772 = vmatprep.subr.bf16.mxu0 %v1548_v4  ;;  %1473 = vmatprep.subr.bf16.mxu1 %v1548_v4  ;;  %v1553_v7 = vld [vmem:[%s2143_s2 + $0x10] ss:$8 sps:$4 sm:$0xff]   ;;  %v1869_v9 = vshrl.u32 %v378_v3, 7  ;;  %v1554_v10 = vld [vmem:[%s2143_s2 + $0x24] ss:$8 sps:$4 sm:$0xff]  }
  0x36   : > { %773 = vmatpush1.bf16.msra.mxu0 %v1550_v5  ;;  %1481 = vmatpush1.bf16.msra.mxu1 %v1550_v5  ;;  %v377_v8 = vunpack.c.0.s8 %v376_v2  ;;  %s2157_s18 = smov (!%p321_p9, %s1710_s18), 1  ;;  %v1556_v11 = vld [vmem:[%s2143_s2 + $0x20] ss:$8 sps:$4 sm:$0xff]   ;;  %v1557_v13 = vld [vmem:[%s2143_s2 + $0x34] ss:$8 sps:$4 sm:$0xff]  }
  0x37   : > { %774 = vmatprep.subr.bf16.mxu0 %v1551_v6  ;;  %1474 = vmatprep.subr.bf16.mxu1 %v1551_v6  ;;  %s1439_s5 = sshll.u32 %s2157_s18, 4  ;;  %v1889_v14 = vld [vmem:[%s262_s13] sm:$0xff]  ;;  %v1900_v17 = vsub.s32 0, %v1869_v9  ;;  %v1907_v19 = vld [vmem:[%s262_s13 + $0x8] sm:$0xff] }
  0x38   : > { %v1881_v12 = vsub.s32 %v377_v8, %v1869_v9  ;;  %v1559_v15 = vld [vmem:[%s2143_s2 + $0x30] ss:$8 sps:$4 sm:$0xff]   ;;  %s328_s10 = scalar_lea.vmem %s2142_s1, %s1439_s5  ;;  %v1560_v18 = vld [vmem:[%s2143_s2 + $0x44] ss:$8 sps:$4 sm:$0xff]   ;;  %v1562_v25 = vld [vmem:[%s2143_s2 + $0x40] ss:$8 sps:$4 sm:$0xff]   ;;  %v374_v54 = vcombine.high %v1889_v14, %v1889_v14  ;;  %v423_v59 = vcombine.high %v1907_v19, %v1907_v19 }
  0x39   : > { %v1912_v23 = vld [vmem:[%s328_s10] sm:$0xff]  ;;  %v1914_v24 = vld [vmem:[%s328_s10 + $0x8] sm:$0xff]  ;;  %v1563_v29 = vld [vmem:[%s2143_s2 + $0x54] ss:$8 sps:$4 sm:$0xff]   ;;  %s1440_s10 = sshll.u32 %s2157_s18, 8 }
  0x3a   : > { %775 = vmatpush1.bf16.msra.mxu0 %v1553_v7  ;;  %1482 = vmatpush1.bf16.msra.mxu1 %v1553_v7  ;;  %v381_v16 = vrot.slane %v1889_v14, %v1881_v12  ;;  %v430_v21 = vrot.slane %v1907_v19, %v1881_v12  ;;  %v1565_v37 = vld [vmem:[%s2143_s2 + $0x50] ss:$8 sps:$4 sm:$0xff]   ;;  %v1566_v41 = vld [vmem:[%s2143_s2 + $0x64] ss:$8 sps:$4 sm:$0xff]   ;;  %v1568_v47 = vld [vmem:[%s2143_s2 + $0x60] ss:$8 sps:$4 sm:$0xff]   ;;  %v388_v2 = vrot.slane %v374_v54, %v1881_v12  ;;  %s2028_s14 = scalar_lea.vmem %s2145_s4, %s1440_s10 }
  0x3b   : > { %776 = vmatprep.subr.bf16.mxu0 %v1554_v10  ;;  %1475 = vmatprep.subr.bf16.mxu1 %v1554_v10  ;;  %v1569_v49 = vld [vmem:[%s2143_s2 + $0x74] ss:$8 sps:$4 sm:$0xff]   ;;  %v1571_v51 = vld [vmem:[%s2143_s2 + $0x70] ss:$8 sps:$4 sm:$0xff]   ;;  %v437_v7 = vrot.slane %v423_v59, %v1881_v12 }
  0x3c   : > { %v397_v20 = vrot.slane %v381_v16, %v1881_v12  ;;  %v389_v22 = vcombine.high %v381_v16, %v381_v16  ;;  %v446_v27 = vrot.slane %v430_v21, %v1881_v12  ;;  %v438_v30 = vcombine.high %v430_v21, %v430_v21 }
  0x3e   : > { %777 = vmatpush1.bf16.msra.mxu0 %v1556_v11  ;;  %1483 = vmatpush1.bf16.msra.mxu1 %v1556_v11  ;;  %v475_v26 = vrot.slane %v397_v20, %v1900_v17  ;;  %v411_v28 = vrot.slane %v389_v22, %v1881_v12  ;;  %v507_v33 = vrot.slane %v446_v27, %v1900_v17 }
  0x3f   : > { %778 = vmatprep.subr.bf16.mxu0 %v1557_v13  ;;  %1476 = vmatprep.subr.bf16.mxu1 %v1557_v13  ;;  %v460_v35 = vrot.slane %v438_v30, %v1881_v12  ;;  %v419_v36 = vcombine.high %v397_v20, %v397_v20  ;;  %v468_v44 = vcombine.high %v446_v27, %v446_v27 }
  0x40   : > { %v552_v31 = vadd.f32 %v475_v26, %v1912_v23  ;;  %v553_v32 = vadd.f32 %v475_v26, %v1914_v24  ;;  %v479_v34 = vrot.slane %v411_v28, %v1900_v17  ;;  %v568_v38 = vadd.f32 %v507_v33, %v1912_v23 }
  0x41   : > { %v569_v39 = vadd.f32 %v507_v33, %v1914_v24  ;;  %v511_v43 = vrot.slane %v460_v35, %v1900_v17  ;;  %v483_v48 = vrot.slane %v419_v36, %v1900_v17  ;;  %v515_v50 = vrot.slane %v468_v44, %v1900_v17 }
  0x42   : > { %779 = vmatpush1.bf16.msra.mxu0 %v1559_v15  ;;  %1484 = vmatpush1.bf16.msra.mxu1 %v1559_v15  ;;  %1574 = vtanh.f32 %v552_v31  ;;  %v554_v40 = vadd.f32 %v479_v34, %v1912_v23  ;;  %v555_v42 = vadd.f32 %v479_v34, %v1914_v24  ;;  %v421_v53 = vcombine.high %v411_v28, %v411_v28 }
  0x43   : > { %780 = vmatprep.subr.bf16.mxu0 %v1560_v18  ;;  %1477 = vmatprep.subr.bf16.mxu1 %v1560_v18  ;;  %1576 = vtanh.f32 %v553_v32  ;;  %v570_v45 = vadd.f32 %v511_v43, %v1912_v23  ;;  %v571_v46 = vadd.f32 %v511_v43, %v1914_v24  ;;  %v556_v52 = vadd.f32 %v483_v48, %v1912_v23 }
  0x44   : > { %1578 = vtanh.f32 %v568_v38  ;;  %v557_v55 = vadd.f32 %v483_v48, %v1914_v24  ;;  %v572_v57 = vadd.f32 %v515_v50, %v1912_v23  ;;  %v470_v58 = vcombine.high %v460_v35, %v460_v35 }
  0x45   : > { %1580 = vtanh.f32 %v569_v39  ;;  %v573_v61 = vadd.f32 %v515_v50, %v1914_v24  ;;  %v487_v1 = vrot.slane %v421_v53, %v1900_v17  ;;  %v404_v13 = vrot.slane %v388_v2, %v1881_v12 }
  0x46   : > { %781 = vmatpush1.bf16.msra.mxu0 %v1562_v25  ;;  %1485 = vmatpush1.bf16.msra.mxu1 %v1562_v25  ;;  %1582 = vtanh.f32 %v554_v40  ;;  %v519_v6 = vrot.slane %v470_v58, %v1900_v17  ;;  %v453_v18 = vrot.slane %v437_v7, %v1881_v12  ;;  %v390_v25 = vcombine.high %v388_v2, %v388_v2 }
  0x47   : > { %782 = vmatprep.subr.bf16.mxu0 %v1563_v29  ;;  %1478 = vmatprep.subr.bf16.mxu1 %v1563_v29  ;;  %1584 = vtanh.f32 %v555_v42  ;;  %v558_v11 = vadd.f32 %v487_v1, %v1912_v23  ;;  %v559_v15 = vadd.f32 %v487_v1, %v1914_v24  ;;  %v491_v22 = vrot.slane %v404_v13, %v1900_v17 }
  0x48   : > { %1586 = vtanh.f32 %v570_v45  ;;  %v574_v16 = vadd.f32 %v519_v6, %v1912_v23  ;;  %v575_v20 = vadd.f32 %v519_v6, %v1914_v24  ;;  %v523_v27 = vrot.slane %v453_v18, %v1900_v17 }
  0x49   : > { %1588 = vtanh.f32 %v571_v46  ;;  %v439_v28 = vcombine.high %v437_v7, %v437_v7  ;;  %v560_v31 = vadd.f32 %v491_v22, %v1912_v23  ;;  %v418_v32 = vrot.slane %v390_v25, %v1881_v12 }
  0x4a   : > { %783 = vmatpush1.bf16.msra.mxu0 %v1565_v37  ;;  %1486 = vmatpush1.bf16.msra.mxu1 %v1565_v37  ;;  %1590 = vtanh.f32 %v556_v52  ;;  %v561_v34 = vadd.f32 %v491_v22, %v1914_v24  ;;  %v576_v35 = vadd.f32 %v523_v27, %v1912_v23  ;;  %v577_v38 = vadd.f32 %v523_v27, %v1914_v24 }
  0x4b   : > { %784 = vmatprep.subr.bf16.mxu0 %v1566_v41  ;;  %1479 = vmatprep.subr.bf16.mxu1 %v1566_v41  ;;  %1592 = vtanh.f32 %v557_v55  ;;  %v467_v36 = vrot.slane %v439_v28, %v1881_v12  ;;  %v495_v40 = vrot.slane %v418_v32, %v1900_v17  ;;  %v420_v45 = vcombine.high %v404_v13, %v404_v13 }
  0x4c   : > { %v1575_v56 = vpop.eup %1574  ;;  %1594 = vtanh.f32 %v572_v57  ;;  %v422_v59 = vcombine.high %v418_v32, %v418_v32  ;;  %v688_v32 = vsub.s32 1, %v1869_v9 }
  0x4d   : > { %v1577_v60 = vpop.eup %1576  ;;  %1596 = vtanh.f32 %v573_v61  ;;  %v527_v42 = vrot.slane %v467_v36, %v1900_v17  ;;  %v562_v12 = vadd.f32 %v495_v40, %v1912_v23  ;;  %v499_v53 = vrot.slane %v420_v45, %v1900_v17 }
  0x4e   : > { %785 = vmatpush1.bf16.msra.mxu0 %v1568_v47  ;;  %1487 = vmatpush1.bf16.msra.mxu1 %v1568_v47  ;;  %v1579_v62 = vpop.eup %1578  ;;  %v616_v63 = vpack.c.bf16 %v1577_v60, %v1575_v56  ;;  %1598 = vtanh.f32 %v558_v11  ;;  %v563_v47 = vadd.f32 %v495_v40, %v1914_v24 }
  0x4f   : > { %786 = vmatprep.subr.bf16.mxu0 %v1569_v49  ;;  %1480 = vmatprep.subr.bf16.mxu1 %v1569_v49  ;;  %v1581_v3 = vpop.eup %1580  ;;  %1600 = vtanh.f32 %v559_v15  ;;  %v578_v48 = vadd.f32 %v527_v42, %v1912_v23  ;;  %v469_v49 = vcombine.high %v453_v18, %v453_v18  ;;  %v564_v58 = vadd.f32 %v499_v53, %v1912_v23 }
  0x50   : > { %v1583_v4 = vpop.eup %1582  ;;  %v624_v5 = vpack.c.bf16 %v1581_v3, %v1579_v62  ;;  %1602 = vtanh.f32 %v574_v16  ;;  %v565_v61 = vadd.f32 %v499_v53, %v1914_v24 }
  0x51   : > { %v1585_v8 = vpop.eup %1584  ;;  %1604 = vtanh.f32 %v575_v20  ;;  %v531_v55 = vrot.slane %v469_v49, %v1900_v17 }
  0x52   : > { %787 = vmatpush1.bf16.msra.mxu0 %v1571_v51  ;;  %1488 = vmatpush1.bf16.msra.mxu1 %v1571_v51  ;;  %v1587_v10 = vpop.eup %1586  ;;  %v617_v19 = vpack.c.bf16 %v1585_v8, %v1583_v4  ;;  %1606 = vtanh.f32 %v560_v31  ;;  %v579_v51 = vadd.f32 %v527_v42, %v1914_v24  ;;  %v503_v4 = vrot.slane %v422_v59, %v1900_v17  ;;  %v680_v31 = vld [vmem:[%s2144_s3] sm:$0x3] }
  0x53   : > { %v1589_v14 = vpop.eup %1588  ;;  %1608 = vtanh.f32 %v561_v34  ;;  %v580_v62 = vadd.f32 %v531_v55, %v1912_v23  ;;  %v581_v2 = vadd.f32 %v531_v55, %v1914_v24  ;;  %v2019_v34 = vrot.slane %v680_v31, %v688_v32 }
  0x54   : > { %v625_v21 = vpack.c.bf16 %v1589_v14, %v1587_v10  ;;  %v1591_v26 = vpop.eup %1590  ;;  %1610 = vtanh.f32 %v576_v35  ;;  %v566_v10 = vadd.f32 %v503_v4, %v1912_v23  ;;  %v567_v13 = vadd.f32 %v503_v4, %v1914_v24 }
  0x55   : > { %805 = vmatmul.mubr.bf16.vlgmr.msra.gmra.mrb[0].mxu0 %v616_v63  ;;  %885 = vmatmul.mubr.bf16.vlgmr.msra.gmra.mrb[0].mxu1 %v624_v5  ;;  %v1593_v29 = vpop.eup %1592  ;;  %1612 = vtanh.f32 %v577_v38  ;;  %v471_v63 = vcombine.high %v467_v36, %v467_v36 }
  0x56   : > { %814 = vmatprep.mubr.bf16.mxu0 %v1723_v0  ;;  %894 = vmatprep.mubr.bf16.mxu1 %v1723_v0  ;;  %v1595_v30 = vpop.eup %1594  ;;  %v618_v37 = vpack.c.bf16 %v1593_v29, %v1591_v26  ;;  %1614 = vtanh.f32 %v562_v12 }
  0x57   : > { %v1597_v33 = vpop.eup %1596  ;;  %1616 = vtanh.f32 %v563_v47  ;;  %v535_v6 = vrot.slane %v471_v63, %v1900_v17 }
  0x58   : > { %v626_v39 = vpack.c.bf16 %v1597_v33, %v1595_v30  ;;  %v1599_v41 = vpop.eup %1598  ;;  %1618 = vtanh.f32 %v578_v48  ;;  %v2017_v33 = vrot.slane %v680_v31, %v1900_v17 }
  0x59   : > { %v1601_v43 = vpop.eup %1600  ;;  %1620 = vtanh.f32 %v579_v51  ;;  %v582_v14 = vadd.f32 %v535_v6, %v1912_v23  ;;  %v583_v16 = vadd.f32 %v535_v6, %v1914_v24 }
  0x5a   : > { %v1603_v44 = vpop.eup %1602  ;;  %v619_v50 = vpack.c.bf16 %v1601_v43, %v1599_v41  ;;  %1622 = vtanh.f32 %v564_v58 }
  0x5b   : > { %v1605_v46 = vpop.eup %1604  ;;  %1624 = vtanh.f32 %v565_v61 }
  0x5c   : > { %v627_v52 = vpack.c.bf16 %v1605_v46, %v1603_v44  ;;  %v1607_v54 = vpop.eup %1606  ;;  %1626 = vtanh.f32 %v580_v62 }
  0x5d   : > { %815 = vmatmul.mubr.bf16.gmra.mrb[4].mxu0 %v617_v19  ;;  %895 = vmatmul.mubr.bf16.gmra.mrb[4].mxu1 %v625_v21  ;;  %v1609_v56 = vpop.eup %1608  ;;  %1628 = vtanh.f32 %v581_v2 }
  0x5e   : > { %824 = vmatprep.mubr.bf16.mxu0 %v1723_v0  ;;  %904 = vmatprep.mubr.bf16.mxu1 %v1723_v0  ;;  %v1611_v57 = vpop.eup %1610  ;;  %v620_v1 = vpack.c.bf16 %v1609_v56, %v1607_v54  ;;  %1630 = vtanh.f32 %v566_v10 }
  0x5f   : > { %v1613_v60 = vpop.eup %1612  ;;  %1632 = vtanh.f32 %v567_v13 }
  0x60   : > { %v628_v3 = vpack.c.bf16 %v1613_v60, %v1611_v57  ;;  %v1615_v5 = vpop.eup %1614  ;;  %1634 = vtanh.f32 %v582_v14 }
  0x61   : > { %v1617_v7 = vpop.eup %1616  ;;  %1636 = vtanh.f32 %v583_v16 }
  0x62   : > { %v1619_v8 = vpop.eup %1618  ;;  %v621_v15 = vpack.c.bf16 %v1617_v7, %v1615_v5 }
  0x63   : > { %v1621_v11 = vpop.eup %1620 }
  0x64   : > { %v629_v18 = vpack.c.bf16 %v1621_v11, %v1619_v8  ;;  %v1623_v19 = vpop.eup %1622 }
  0x65   : > { %825 = vmatmul.mubr.bf16.gmra.mrb[8].mxu0 %v618_v37  ;;  %905 = vmatmul.mubr.bf16.gmra.mrb[8].mxu1 %v626_v39  ;;  %v1625_v20 = vpop.eup %1624 }
  0x66   : > { %834 = vmatprep.mubr.bf16.mxu0 %v1723_v0  ;;  %914 = vmatprep.mubr.bf16.mxu1 %v1723_v0  ;;  %v1627_v21 = vpop.eup %1626  ;;  %v622_v25 = vpack.c.bf16 %v1625_v20, %v1623_v19 }
  0x67   : > { %v1629_v22 = vpop.eup %1628 }
  0x68   : > { %v630_v23 = vpack.c.bf16 %v1629_v22, %v1627_v21  ;;  %v1631_v26 = vpop.eup %1630 }
  0x69   : > { %v1633_v24 = vpop.eup %1632 }
  0x6a   : > { %v1635_v27 = vpop.eup %1634  ;;  %v623_v29 = vpack.c.bf16 %v1633_v24, %v1631_v26 }
  0x6b   : > { %v1637_v28 = vpop.eup %1636 }
  0x6c   : > { %v631_v30 = vpack.c.bf16 %v1637_v28, %v1635_v27 }
  0x6d   : > { %835 = vmatmul.mubr.bf16.gmra.mrb[12].mxu0 %v619_v50  ;;  %915 = vmatmul.mubr.bf16.gmra.mrb[12].mxu1 %v627_v52 }
  0x6e   : > { %844 = vmatprep.mubr.bf16.mxu0 %v1723_v0  ;;  %924 = vmatprep.mubr.bf16.mxu1 %v1723_v0 }
  0x75   : > { %845 = vmatmul.mubr.bf16.gmra.mrb[16].mxu0 %v620_v1  ;;  %925 = vmatmul.mubr.bf16.gmra.mrb[16].mxu1 %v628_v3 }
  0x76   : > { %854 = vmatprep.mubr.bf16.mxu0 %v1723_v0  ;;  %934 = vmatprep.mubr.bf16.mxu1 %v1723_v0 }
  0x7d   : > { %855 = vmatmul.mubr.bf16.gmra.mrb[20].mxu0 %v621_v15  ;;  %935 = vmatmul.mubr.bf16.gmra.mrb[20].mxu1 %v629_v18 }
  0x7e   : > { %864 = vmatprep.mubr.bf16.mxu0 %v1723_v0  ;;  %944 = vmatprep.mubr.bf16.mxu1 %v1723_v0 }
  0x85   : > { %865 = vmatmul.mubr.bf16.gmra.mrb[24].mxu0 %v622_v25  ;;  %945 = vmatmul.mubr.bf16.gmra.mrb[24].mxu1 %v630_v23 }
  0x86   : > { %874 = vmatprep.mubr.bf16.mxu0 %v1723_v0  ;;  %954 = vmatprep.mubr.bf16.mxu1 %v1723_v0 }
  0x8d   : > { %875 = vmatmul.mubr.bf16.gmra.mrb[28].mxu0 %v623_v29  ;;  %955 = vmatmul.mubr.bf16.gmra.mrb[28].mxu1 %v631_v30 }
 0x128   : > { %v806_v35 = vpop.f32.mrb[0].mxu0  ;;  %v886_v0 = vpop.f32.mrb[0].mxu1 }
 0x129   : > { %v807_v36 = vadd.f32 %v806_v35, %v2017_v33  ;;  %v808_v37 = vpop.f32.mrb[1].mxu0  ;;  %v887_v38 = vadd.f32 %v886_v0, %v2017_v33  ;;  %v888_v40 = vpop.f32.mrb[1].mxu1 }
 0x12a   : > { %v809_v39 = vadd.f32 %v808_v37, %v2019_v34  ;;  %v810_v41 = vpop.f32.mrb[2].mxu0  ;;  %v889_v9 = vadd.f32 %v888_v40, %v2019_v34  ;;  %v890_v42 = vpop.f32.mrb[2].mxu1 }
 0x12b   : > { %v811_v17 = vadd.f32 %v810_v41, %v2017_v33  ;;  %v812_v43 = vpop.f32.mrb[3].mxu0  ;;  %v891_v12 = vadd.f32 %v890_v42, %v2017_v33  ;;  %v892_v46 = vpop.f32.mrb[3].mxu1 }
 0x12c   : > { %v1441_v44 = vpack.c.bf16 %v809_v39, %v807_v36  ;;  %v813_v45 = vadd.f32 %v812_v43, %v2019_v34  ;;  %v1457_v47 = vpack.c.bf16 %v889_v9, %v887_v38  ;;  %v893_v48 = vadd.f32 %v892_v46, %v2019_v34 }
 0x12e   : > { %1157 = vst [vmem:[%s2028_s14] sm:$0xff] %v1441_v44  ;;  %v1442_v49 = vpack.c.bf16 %v813_v45, %v811_v17  ;;  %1173 = vst [vmem:[%s2028_s14 + $0x80] sm:$0xff] %v1457_v47  ;;  %v1458_v50 = vpack.c.bf16 %v893_v48, %v891_v12 }
 0x130   : > { %1158 = vst [vmem:[%s2028_s14 + $0x8] sm:$0xff] %v1442_v49  ;;  %v816_v51 = vpop.f32.mrb[4].mxu0  ;;  %1174 = vst [vmem:[%s2028_s14 + $0x88] sm:$0xff] %v1458_v50  ;;  %v896_v53 = vpop.f32.mrb[4].mxu1 }
 0x131   : > { %v817_v52 = vadd.f32 %v816_v51, %v2017_v33  ;;  %v818_v54 = vpop.f32.mrb[5].mxu0  ;;  %v897_v55 = vadd.f32 %v896_v53, %v2017_v33  ;;  %v898_v57 = vpop.f32.mrb[5].mxu1 }
 0x132   : > { %v819_v56 = vadd.f32 %v818_v54, %v2019_v34  ;;  %v820_v58 = vpop.f32.mrb[6].mxu0  ;;  %v899_v59 = vadd.f32 %v898_v57, %v2019_v34  ;;  %v900_v61 = vpop.f32.mrb[6].mxu1 }
 0x133   : > { %v821_v60 = vadd.f32 %v820_v58, %v2017_v33  ;;  %v822_v62 = vpop.f32.mrb[7].mxu0  ;;  %v901_v1 = vadd.f32 %v900_v61, %v2017_v33  ;;  %v902_v3 = vpop.f32.mrb[7].mxu1 }
 0x134   : > { %v1443_v63 = vpack.c.bf16 %v819_v56, %v817_v52  ;;  %v823_v2 = vadd.f32 %v822_v62, %v2019_v34  ;;  %v1459_v4 = vpack.c.bf16 %v899_v59, %v897_v55  ;;  %v903_v5 = vadd.f32 %v902_v3, %v2019_v34 }
 0x136   : > { %1159 = vst [vmem:[%s2028_s14 + $0x10] sm:$0xff] %v1443_v63  ;;  %v1444_v6 = vpack.c.bf16 %v823_v2, %v821_v60  ;;  %1175 = vst [vmem:[%s2028_s14 + $0x90] sm:$0xff] %v1459_v4  ;;  %v1460_v7 = vpack.c.bf16 %v903_v5, %v901_v1 }
 0x138   : > { %1160 = vst [vmem:[%s2028_s14 + $0x18] sm:$0xff] %v1444_v6  ;;  %v826_v8 = vpop.f32.mrb[8].mxu0  ;;  %1176 = vst [vmem:[%s2028_s14 + $0x98] sm:$0xff] %v1460_v7  ;;  %v906_v11 = vpop.f32.mrb[8].mxu1 }
 0x139   : > { %v827_v10 = vadd.f32 %v826_v8, %v2017_v33  ;;  %v828_v13 = vpop.f32.mrb[9].mxu0  ;;  %v907_v14 = vadd.f32 %v906_v11, %v2017_v33  ;;  %v908_v16 = vpop.f32.mrb[9].mxu1 }
 0x13a   : > { %v829_v15 = vadd.f32 %v828_v13, %v2019_v34  ;;  %v830_v18 = vpop.f32.mrb[10].mxu0  ;;  %v909_v19 = vadd.f32 %v908_v16, %v2019_v34  ;;  %v910_v21 = vpop.f32.mrb[10].mxu1 }
 0x13b   : > { %v831_v20 = vadd.f32 %v830_v18, %v2017_v33  ;;  %v832_v22 = vpop.f32.mrb[11].mxu0  ;;  %v911_v23 = vadd.f32 %v910_v21, %v2017_v33  ;;  %v912_v24 = vpop.f32.mrb[11].mxu1 }
 0x13c   : > { %v1445_v25 = vpack.c.bf16 %v829_v15, %v827_v10  ;;  %v833_v26 = vadd.f32 %v832_v22, %v2019_v34  ;;  %v1461_v27 = vpack.c.bf16 %v909_v19, %v907_v14  ;;  %v913_v28 = vadd.f32 %v912_v24, %v2019_v34 }
 0x13e   : > { %1161 = vst [vmem:[%s2028_s14 + $0x20] sm:$0xff] %v1445_v25  ;;  %v1446_v29 = vpack.c.bf16 %v833_v26, %v831_v20  ;;  %1177 = vst [vmem:[%s2028_s14 + $0xa0] sm:$0xff] %v1461_v27  ;;  %v1462_v30 = vpack.c.bf16 %v913_v28, %v911_v23 }
 0x140   : > { %1162 = vst [vmem:[%s2028_s14 + $0x28] sm:$0xff] %v1446_v29  ;;  %v836_v31 = vpop.f32.mrb[12].mxu0  ;;  %1178 = vst [vmem:[%s2028_s14 + $0xa8] sm:$0xff] %v1462_v30  ;;  %v916_v35 = vpop.f32.mrb[12].mxu1 }
 0x141   : > { %v837_v32 = vadd.f32 %v836_v31, %v2017_v33  ;;  %v838_v36 = vpop.f32.mrb[13].mxu0  ;;  %v917_v0 = vadd.f32 %v916_v35, %v2017_v33  ;;  %v918_v38 = vpop.f32.mrb[13].mxu1 }
 0x142   : > { %v839_v37 = vadd.f32 %v838_v36, %v2019_v34  ;;  %v840_v39 = vpop.f32.mrb[14].mxu0  ;;  %v919_v40 = vadd.f32 %v918_v38, %v2019_v34  ;;  %v920_v9 = vpop.f32.mrb[14].mxu1 }
 0x143   : > { %v841_v41 = vadd.f32 %v840_v39, %v2017_v33  ;;  %v842_v17 = vpop.f32.mrb[15].mxu0  ;;  %v921_v43 = vadd.f32 %v920_v9, %v2017_v33  ;;  %v922_v12 = vpop.f32.mrb[15].mxu1 }
 0x144   : > { %v1447_v42 = vpack.c.bf16 %v839_v37, %v837_v32  ;;  %v843_v44 = vadd.f32 %v842_v17, %v2019_v34  ;;  %v1463_v45 = vpack.c.bf16 %v919_v40, %v917_v0  ;;  %v923_v46 = vadd.f32 %v922_v12, %v2019_v34 }
 0x146   : > { %1163 = vst [vmem:[%s2028_s14 + $0x30] sm:$0xff] %v1447_v42  ;;  %v1448_v47 = vpack.c.bf16 %v843_v44, %v841_v41  ;;  %1179 = vst [vmem:[%s2028_s14 + $0xb0] sm:$0xff] %v1463_v45  ;;  %v1464_v48 = vpack.c.bf16 %v923_v46, %v921_v43 }
 0x148   : > { %1164 = vst [vmem:[%s2028_s14 + $0x38] sm:$0xff] %v1448_v47  ;;  %v846_v49 = vpop.f32.mrb[16].mxu0  ;;  %1180 = vst [vmem:[%s2028_s14 + $0xb8] sm:$0xff] %v1464_v48  ;;  %v926_v51 = vpop.f32.mrb[16].mxu1 }
 0x149   : > { %v847_v50 = vadd.f32 %v846_v49, %v2017_v33  ;;  %v848_v52 = vpop.f32.mrb[17].mxu0  ;;  %v927_v53 = vadd.f32 %v926_v51, %v2017_v33  ;;  %v928_v55 = vpop.f32.mrb[17].mxu1 }
 0x14a   : > { %v849_v54 = vadd.f32 %v848_v52, %v2019_v34  ;;  %v850_v56 = vpop.f32.mrb[18].mxu0  ;;  %v929_v57 = vadd.f32 %v928_v55, %v2019_v34  ;;  %v930_v59 = vpop.f32.mrb[18].mxu1 }
 0x14b   : > { %v851_v58 = vadd.f32 %v850_v56, %v2017_v33  ;;  %v852_v60 = vpop.f32.mrb[19].mxu0  ;;  %v931_v62 = vadd.f32 %v930_v59, %v2017_v33  ;;  %v932_v1 = vpop.f32.mrb[19].mxu1 }
 0x14c   : > { %v1449_v61 = vpack.c.bf16 %v849_v54, %v847_v50  ;;  %v853_v63 = vadd.f32 %v852_v60, %v2019_v34  ;;  %v1465_v2 = vpack.c.bf16 %v929_v57, %v927_v53  ;;  %v933_v3 = vadd.f32 %v932_v1, %v2019_v34 }
 0x14e   : > { %1165 = vst [vmem:[%s2028_s14 + $0x40] sm:$0xff] %v1449_v61  ;;  %v1450_v4 = vpack.c.bf16 %v853_v63, %v851_v58  ;;  %1181 = vst [vmem:[%s2028_s14 + $0xc0] sm:$0xff] %v1465_v2  ;;  %v1466_v5 = vpack.c.bf16 %v933_v3, %v931_v62 }
 0x150   : > { %1166 = vst [vmem:[%s2028_s14 + $0x48] sm:$0xff] %v1450_v4  ;;  %v856_v6 = vpop.f32.mrb[20].mxu0  ;;  %1182 = vst [vmem:[%s2028_s14 + $0xc8] sm:$0xff] %v1466_v5  ;;  %v936_v8 = vpop.f32.mrb[20].mxu1 }
 0x151   : > { %v857_v7 = vadd.f32 %v856_v6, %v2017_v33  ;;  %v858_v10 = vpop.f32.mrb[21].mxu0  ;;  %v937_v11 = vadd.f32 %v936_v8, %v2017_v33  ;;  %v938_v14 = vpop.f32.mrb[21].mxu1 }
 0x152   : > { %v859_v13 = vadd.f32 %v858_v10, %v2019_v34  ;;  %v860_v15 = vpop.f32.mrb[22].mxu0  ;;  %v939_v16 = vadd.f32 %v938_v14, %v2019_v34  ;;  %v940_v19 = vpop.f32.mrb[22].mxu1 }
 0x153   : > { %v861_v18 = vadd.f32 %v860_v15, %v2017_v33  ;;  %v862_v20 = vpop.f32.mrb[23].mxu0  ;;  %v941_v22 = vadd.f32 %v940_v19, %v2017_v33  ;;  %v942_v23 = vpop.f32.mrb[23].mxu1 }
 0x154   : > { %v1451_v21 = vpack.c.bf16 %v859_v13, %v857_v7  ;;  %v863_v25 = vadd.f32 %v862_v20, %v2019_v34  ;;  %v1467_v26 = vpack.c.bf16 %v939_v16, %v937_v11  ;;  %v943_v24 = vadd.f32 %v942_v23, %v2019_v34 }
 0x156   : > { %1167 = vst [vmem:[%s2028_s14 + $0x50] sm:$0xff] %v1451_v21  ;;  %v1452_v27 = vpack.c.bf16 %v863_v25, %v861_v18  ;;  %1183 = vst [vmem:[%s2028_s14 + $0xd0] sm:$0xff] %v1467_v26  ;;  %v1468_v28 = vpack.c.bf16 %v943_v24, %v941_v22 }
 0x158   : > { %1168 = vst [vmem:[%s2028_s14 + $0x58] sm:$0xff] %v1452_v27  ;;  %v866_v29 = vpop.f32.mrb[24].mxu0  ;;  %1184 = vst [vmem:[%s2028_s14 + $0xd8] sm:$0xff] %v1468_v28  ;;  %v946_v31 = vpop.f32.mrb[24].mxu1 }
 0x159   : > { %v867_v30 = vadd.f32 %v866_v29, %v2017_v33  ;;  %v868_v32 = vpop.f32.mrb[25].mxu0  ;;  %v947_v35 = vadd.f32 %v946_v31, %v2017_v33  ;;  %v948_v0 = vpop.f32.mrb[25].mxu1 }
 0x15a   : > { %v869_v36 = vadd.f32 %v868_v32, %v2019_v34  ;;  %v870_v37 = vpop.f32.mrb[26].mxu0  ;;  %v949_v38 = vadd.f32 %v948_v0, %v2019_v34  ;;  %v950_v40 = vpop.f32.mrb[26].mxu1 }
 0x15b   : > { %v871_v39 = vadd.f32 %v870_v37, %v2017_v33  ;;  %v872_v41 = vpop.f32.mrb[27].mxu0  ;;  %v951_v17 = vadd.f32 %v950_v40, %v2017_v33  ;;  %v952_v43 = vpop.f32.mrb[27].mxu1 }
 0x15c   : > { %v1453_v9 = vpack.c.bf16 %v869_v36, %v867_v30  ;;  %v873_v42 = vadd.f32 %v872_v41, %v2019_v34  ;;  %v1469_v44 = vpack.c.bf16 %v949_v38, %v947_v35  ;;  %v953_v12 = vadd.f32 %v952_v43, %v2019_v34 }
 0x15e   : > { %1169 = vst [vmem:[%s2028_s14 + $0x60] sm:$0xff] %v1453_v9  ;;  %v1454_v45 = vpack.c.bf16 %v873_v42, %v871_v39  ;;  %1185 = vst [vmem:[%s2028_s14 + $0xe0] sm:$0xff] %v1469_v44  ;;  %v1470_v46 = vpack.c.bf16 %v953_v12, %v951_v17 }
 0x160   : > { %1170 = vst [vmem:[%s2028_s14 + $0x68] sm:$0xff] %v1454_v45  ;;  %v876_v47 = vpop.f32.mrb[28].mxu0  ;;  %1186 = vst [vmem:[%s2028_s14 + $0xe8] sm:$0xff] %v1470_v46  ;;  %v956_v49 = vpop.f32.mrb[28].mxu1 }
 0x161   : > { %v877_v48 = vadd.f32 %v876_v47, %v2017_v33  ;;  %v878_v50 = vpop.f32.mrb[29].mxu0  ;;  %v957_v51 = vadd.f32 %v956_v49, %v2017_v33  ;;  %v958_v53 = vpop.f32.mrb[29].mxu1 }
 0x162   : > { %v879_v52 = vadd.f32 %v878_v50, %v2019_v34  ;;  %v880_v54 = vpop.f32.mrb[30].mxu0  ;;  %v959_v55 = vadd.f32 %v958_v53, %v2019_v34  ;;  %v960_v57 = vpop.f32.mrb[30].mxu1 }
 0x163   : > { %v881_v56 = vadd.f32 %v880_v54, %v2017_v33  ;;  %v882_v58 = vpop.f32.mrb[31].mxu0  ;;  %v961_v60 = vadd.f32 %v960_v57, %v2017_v33  ;;  %v962_v62 = vpop.f32.mrb[31].mxu1 }
 0x164   : > { %v1455_v59 = vpack.c.bf16 %v879_v52, %v877_v48  ;;  %v883_v61 = vadd.f32 %v882_v58, %v2019_v34  ;;  %v1471_v63 = vpack.c.bf16 %v959_v55, %v957_v51  ;;  %v963_v1 = vadd.f32 %v962_v62, %v2019_v34 }
 0x166   : > { %1171 = vst [vmem:[%s2028_s14 + $0x70] sm:$0xff] %v1455_v59  ;;  %v1456_v2 = vpack.c.bf16 %v883_v61, %v881_v56  ;;  %1187 = vst [vmem:[%s2028_s14 + $0xf0] sm:$0xff] %v1471_v63  ;;  %v1472_v3 = vpack.c.bf16 %v963_v1, %v961_v60 }
 0x168   : > { %1172 = vst [vmem:[%s2028_s14 + $0x78] sm:$0xff] %v1456_v2  ;;  %1188 = vst [vmem:[%s2028_s14 + $0xf8] sm:$0xff] %v1472_v3 }
 0x169 PF: > { %s17_s20 = sadd.s32 1, %s1718_s20   ;;  %s2149_s15 = smov %s1702_s16 }
 0x16a   : > { %p14_p7 = scmp.ge.s32.totalorder %s17_s20, 4   ;;  %s2150_s16 = smov %s1706_s17 }
 0x16b   : > { %s2151_s17 = smov %s1799_s27  ;;  %s2152_s18 = smov %s1714_s19 }
 0x16c   : > { %s2153_s19 = smov %s2155_s22  ;;  %16 = sbr.rel (!%p14_p7) target bundleno = 4 (0x4), region = 89 }
 0x173   :  { %1241 = vsyncpa [#allocation4], 1 }
 0x174   :  { %1243 = vsyncpa [#allocation4 + $0x1], 1 }

</bundles_post_ra>
